<compile_context>
chip_gen: v6e
topology: v6e:2x2x1
jax: 0.10.0
libtpu: 0.0.40
codegen_flags: <defaults>
</compile_context>

<pallas_src>
import functools

import numpy as np

import jax
import jax.numpy as jnp
from jax.experimental import pallas as pl
from jax.experimental.pallas import tpu as pltpu


# --------------------------------------------------------------------------
# Kernel 1: (ELU) -> xW -> transposed features + attention logits.
# Grid: 1-D over node-row tiles ("parallel").
# --------------------------------------------------------------------------
def _transform_kernel(x_ref, w_ref, asrc_mat_ref, adstt_mat_ref,
                      xwt_ref, asrc_ref, adstt_ref, *, apply_elu):
    x = x_ref[...].astype(jnp.float32)
    if apply_elu:
        # F.elu of the previous layer's output, fused into this layer.
        # (The appended constant-1 feature column maps to ELU(1)=1, harmless.)
        x = jnp.where(x > 0, x, jnp.expm1(x))

    # f32 MXU matmul (f32 x f32 -> f32 is supported everywhere, incl. interpret).
    xw = jnp.dot(x, w_ref[...], preferred_element_type=jnp.float32)     # [R, HS]
    xw_t = xw.T                                                          # [HS, R]
    xwt_ref[...] = xw_t.astype(jnp.bfloat16)

    # Per-head attention logits via block-diagonal matrices (one MXU op each).
    asrc_ref[...] = jnp.dot(xw, asrc_mat_ref[...],
                            preferred_element_type=jnp.float32)          # [R, H]
    adstt_ref[...] = jnp.dot(adstt_mat_ref[...], xw_t,
                             preferred_element_type=jnp.float32)         # [H, R]


# --------------------------------------------------------------------------
# Kernel 2: block-sparse masked softmax over neighbours (online / flash-style)
# + aggregation, in transposed (source-major) layout.
# Grid: (target tiles ["parallel"], compacted source-block slots ["arbitrary"]).
# --------------------------------------------------------------------------
def _attn_agg_kernel(cnt_ref, idx_ref, adstt_ref, asrc_ref, xwt_ref, adj_ref,
                     b_ref, o_ref, m_sc, acc_sc,
                     *, heads, out_ch, stride, concat, out_pad, neg_slope=0.2):
    i = pl.program_id(0)
    j = pl.program_id(1)

    @pl.when(j == 0)
    def _init():
        m_sc[...] = jnp.full(m_sc.shape, -1e30, m_sc.dtype)
        acc_sc[...] = jnp.zeros(acc_sc.shape, acc_sc.dtype)

    # Only occupied adjacency blocks do work (padded repeats are skipped).
    @pl.when(j < cnt_ref[i])
    def _compute():
        neg_big = jnp.float32(-1e30)
        # Mask bias computed once per block, shared by all heads.  adj is
        # [source, target] so masked p underflows to exactly 0 after exp.
        mask_bias = jnp.where(adj_ref[...] > 0, jnp.float32(0.0), neg_big)  # [K, T]

        for h in range(heads):                 # static unroll
            src = asrc_ref[:, h:h + 1]                                   # [K, 1]
            dst = adstt_ref[h:h + 1, :]                                  # [1, T]
            e = src + dst                                                # [K, T]
            e = jnp.where(e > 0, e, neg_slope * e)                       # LeakyReLU(0.2)
            e = e + mask_bias

            m_prev = m_sc[h:h + 1, :]                                    # [1, T]
            m_new = jnp.maximum(m_prev, jnp.max(e, axis=0, keepdims=True))
            corr = jnp.exp(m_prev - m_new)                               # [1, T]
            p = jnp.exp(e - m_new)                                       # [K, T]

            # Per-head LHS rows: [0:C] = (xW)_h^T, row C = ones (folds the
            # softmax denominator into the matmul), rest zero.
            lhs = xwt_ref[h * stride:(h + 1) * stride, :].astype(jnp.float32)  # [S, K]
            acc_sc[h, :, :] = corr * acc_sc[h, :, :] + jnp.dot(
                lhs, p, preferred_element_type=jnp.float32)              # [S, T]
            m_sc[h:h + 1, :] = m_new

    @pl.when(j == pl.num_programs(1) - 1)
    def _finalize():
        parts = []
        for h in range(heads):
            # Row `out_ch` of the per-head accumulator carries the denominator.
            inv_l = 1.0 / acc_sc[h, out_ch:out_ch + 1, :]                # [1, T] exact
            parts.append(acc_sc[h, 0:out_ch, :] * inv_l)                 # [C, T]
        if concat:
            res = parts[0] if heads == 1 else jnp.concatenate(parts, axis=0)
        else:
            res = parts[0]
            for h in range(1, heads):
                res = res + parts[h]
            res = res * jnp.float32(1.0 / heads)
        rows = res.shape[0]
        if rows < out_pad:
            res = jnp.concatenate(
                [res, jnp.zeros((out_pad - rows, res.shape[1]), jnp.float32)],
                axis=0)                                                  # [out_pad, T]
        out = res.T + b_ref[...]                                         # [T, out_pad]
        o_ref[...] = out.astype(o_ref.dtype)                             # lane-dense vst


# --------------------------------------------------------------------------
# Glue
# --------------------------------------------------------------------------
def gat_conv(x, w, a_src, a_dst, bias, adj_st, blk_cnt, blk_idx, *,
             heads, out_ch, concat, apply_elu, out_dtype, tile=128):
    n_pad, in_feat = x.shape
    H, C = heads, out_ch
    # Per-head row stride in xW^T: C feature rows + 1 ones row, padded.  Round
    # HS up to >=128 when possible so all stores/transposes stay lane-dense.
    S = ((C + 1 + 7) // 8) * 8
    if 128 % H == 0:
        S = max(S, 128 // H)
    HS = H * S
    out_dim = H * C if concat else C
    out_pad = 128
    assert out_dim <= out_pad and n_pad % tile == 0

    w = w.astype(jnp.float32)
    if w.shape[0] < in_feat:               # layer-2 input has zero-padded columns
        w = jnp.pad(w, ((0, in_feat - w.shape[0]), (0, 0)))

    # Augmented weight: head-h columns live at [h*S, h*S+C); an extra constant-1
    # input feature drives the per-head "ones" row used for the denominator.
    w3 = jnp.pad(w.reshape(in_feat, H, C), ((0, 0), (0, 0), (0, S - C)))
    ones_row = jnp.zeros((1, H, S), jnp.float32).at[:, :, C].set(1.0)
    w_aug = jnp.concatenate([w3, ones_row], axis=0).reshape(in_feat + 1, HS)

    eye_h = jnp.eye(H, dtype=jnp.float32)

    def att_mat(a):                        # [H, C] -> block-diagonal [HS, H]
        m = a.astype(jnp.float32)[:, :, None] * eye_h[:, None, :]        # [H, C, H]
        return jnp.pad(m, ((0, 0), (0, S - C), (0, 0))).reshape(HS, H)

    a_src_mat = att_mat(a_src)
    a_dst_mat_t = att_mat(a_dst).T                                       # [H, HS]
    b_pad = jnp.zeros((1, out_pad), jnp.float32).at[:, :out_dim].set(bias)
    x_aug = jnp.concatenate([x, jnp.ones((n_pad, 1), x.dtype)], axis=1)

    # ---- kernel 1: transform + logits, large row tiles ----------------------
    row_tile = next(t for t in (512, 256, 128) if n_pad % t == 0)
    xw_t, asrc, adst_t = pl.pallas_call(
        functools.partial(_transform_kernel, apply_elu=apply_elu),
        grid_spec=pltpu.PrefetchScalarGridSpec(
            num_scalar_prefetch=0,
            grid=(n_pad // row_tile,),
            in_specs=[pl.BlockSpec((row_tile, in_feat + 1), lambda i: (i, 0)),
                      pl.BlockSpec((in_feat + 1, HS), lambda i: (0, 0)),
                      pl.BlockSpec((HS, H), lambda i: (0, 0)),
                      pl.BlockSpec((H, HS), lambda i: (0, 0))],
            out_specs=[pl.BlockSpec((HS, row_tile), lambda i: (0, i)),
                       pl.BlockSpec((row_tile, H), lambda i: (i, 0)),
                       pl.BlockSpec((H, row_tile), lambda i: (0, i))]),
        out_shape=[jax.ShapeDtypeStruct((HS, n_pad), jnp.bfloat16),
                   jax.ShapeDtypeStruct((n_pad, H), jnp.float32),
                   jax.ShapeDtypeStruct((H, n_pad), jnp.float32)],
        compiler_params=pltpu.CompilerParams(dimension_semantics=("parallel",)),
    )(x_aug, w_aug, a_src_mat, a_dst_mat_t)

    # ---- kernel 2: block-sparse streamed masked softmax + aggregation -------
    gr = n_pad // tile
    max_blk = blk_idx.shape[1]
    out = pl.pallas_call(
        functools.partial(_attn_agg_kernel, heads=H, out_ch=C, stride=S,
                          concat=concat, out_pad=out_pad),
        grid_spec=pltpu.PrefetchScalarGridSpec(
            num_scalar_prefetch=2,                      # blk_cnt, blk_idx (SMEM)
            grid=(gr, max_blk),
            in_specs=[
                pl.BlockSpec((H, tile), lambda i, j, cnt, idx: (0, i)),          # adst^T
                pl.BlockSpec((tile, H), lambda i, j, cnt, idx: (idx[i, j], 0)),  # asrc
                pl.BlockSpec((HS, tile), lambda i, j, cnt, idx: (0, idx[i, j])), # xW^T aug
                pl.BlockSpec((tile, tile), lambda i, j, cnt, idx: (idx[i, j], i)),  # adj blk
                pl.BlockSpec((1, out_pad), lambda i, j, cnt, idx: (0, 0))],      # bias
            out_specs=pl.BlockSpec((tile, out_pad), lambda i, j, cnt, idx: (i, 0)),
            scratch_shapes=[pltpu.VMEM((H, tile), jnp.float32),        # running max
                            pltpu.VMEM((H, S, tile), jnp.float32)]),   # acc (+denominator row)
        out_shape=jax.ShapeDtypeStruct((n_pad, out_pad), out_dtype),
        compiler_params=pltpu.CompilerParams(
            dimension_semantics=("parallel", "arbitrary")),
    )(blk_cnt, blk_idx, adst_t, asrc, xw_t, adj_st, b_pad)
    return out


def gat_forward(x, edge_index, params, *, tile=128):
    n = x.shape[0]
    n_pad = int(pl.cdiv(n, tile)) * tile
    gr = n_pad // tile

    # Dense adjacency in (source, target) layout, bf16, with self-loops on every
    # (including padded) node -> every softmax row is well defined.
    adj = jnp.zeros((n_pad, n_pad), jnp.bfloat16)
    adj = adj.at[edge_index[0], edge_index[1]].set(1.0)
    adj = jnp.maximum(adj, jnp.eye(n_pad, dtype=jnp.bfloat16))

    # Host-side block occupancy -> compacted per-target-tile source-block lists
    # (scalar prefetch), so kernel 2 only visits nonzero 128x128 blocks.
    # TODO(synk): under jit this needs a static max_blk bound (concrete here).
    ei = np.asarray(edge_index)
    occ = np.zeros((gr, gr), dtype=bool)                  # occ[src_blk, tgt_blk]
    occ[ei[0] // tile, ei[1] // tile] = True
    occ[np.arange(gr), np.arange(gr)] = True              # self-loop diagonal blocks
    cnt = occ.sum(axis=0).astype(np.int32)
    max_blk = int(cnt.max())
    idx = np.zeros((gr, max_blk), np.int32)
    for ib in range(gr):
        nz = np.nonzero(occ[:, ib])[0]
        idx[ib, :len(nz)] = nz
        idx[ib, len(nz):] = nz[-1]                        # repeats, skipped by pl.when
    blk_cnt = jnp.asarray(cnt)
    blk_idx = jnp.asarray(idx)

    x_pad = jnp.pad(x, ((0, n_pad - n), (0, 0)))

    # conv1: in -> hidden, heads, concat=True (output stored bf16, lane-padded).
    h1 = gat_conv(x_pad, params["w1"], params["a_src1"], params["a_dst1"],
                  params["b1"], adj, blk_cnt, blk_idx,
                  heads=params["heads"], out_ch=params["hidden"],
                  concat=True, apply_elu=False, out_dtype=jnp.bfloat16, tile=tile)
    # h1 is [n_pad, 128] bf16 with exact-zero padded columns; ELU is fused into conv2.
    h2 = gat_conv(h1, params["w2"], params["a_src2"], params["a_dst2"],
                  params["b2"], adj, blk_cnt, blk_idx,
                  heads=1, out_ch=1, concat=False, apply_elu=True,
                  out_dtype=jnp.float32, tile=tile)
    return h2[:n, 0]                                      # == x.view(-1)


# --------------------------------------------------------------------------
# Pure-JAX reference (f32) for a sanity check of the kernel path.
# --------------------------------------------------------------------------
def gat_reference(x, edge_index, params):
    n = x.shape[0]
    adj = jnp.zeros((n, n), jnp.float32).at[edge_index[1], edge_index[0]].set(1.0)
    adj = jnp.maximum(adj, jnp.eye(n, dtype=jnp.float32))

    def conv(x, w, a_src, a_dst, b, heads, out_ch, concat):
        xw = (x @ w).reshape(n, heads, out_ch)
        asrc = jnp.einsum("nhc,hc->nh", xw, a_src)
        adst = jnp.einsum("nhc,hc->nh", xw, a_dst)
        e = adst[:, None, :] + asrc[None, :, :]
        e = jnp.where(e > 0, e, 0.2 * e)
        e = jnp.where(adj[:, :, None] > 0, e, -jnp.inf)
        alpha = jax.nn.softmax(e, axis=1)
        out = jnp.einsum("ijh,jhc->ihc", alpha, xw)
        out = out.reshape(n, heads * out_ch) if concat else out.mean(axis=1)
        return out + b

    h1 = conv(x, params["w1"], params["a_src1"], params["a_dst1"], params["b1"],
              params["heads"], params["hidden"], True)
    h1 = jnp.where(h1 > 0, h1, jnp.expm1(h1))
    h2 = conv(h1, params["w2"], params["a_src2"], params["a_dst2"], params["b2"],
              1, 1, False)
    return h2[:, 0]


def make_params(key, in_channels, hidden_channels, heads):
    ks = jax.random.split(key, 8)
    s1 = 1.0 / jnp.sqrt(jnp.float32(in_channels))
    s2 = 1.0 / jnp.sqrt(jnp.float32(hidden_channels * heads))
    return {
        "heads": heads,
        "hidden": hidden_channels,
        "w1": s1 * jax.random.normal(ks[0], (in_channels, heads * hidden_channels), jnp.float32),
        "a_src1": 0.1 * jax.random.normal(ks[1], (heads, hidden_channels), jnp.float32),
        "a_dst1": 0.1 * jax.random.normal(ks[2], (heads, hidden_channels), jnp.float32),
        "b1": 0.01 * jax.random.normal(ks[3], (1, heads * hidden_channels), jnp.float32),
        "w2": s2 * jax.random.normal(ks[4], (heads * hidden_channels, 1), jnp.float32),
        "a_src2": 0.1 * jax.random.normal(ks[5], (1, 1), jnp.float32),
        "a_dst2": 0.1 * jax.random.normal(ks[6], (1, 1), jnp.float32),
        "b2": 0.01 * jax.random.normal(ks[7], (1, 1), jnp.float32),
    }


if __name__ == "__main__":
    key = jax.random.PRNGKey(0)
    k_x, k_p = jax.random.split(key)

    # Small graph that still exercises the tiled grid / block-sparse path
    # (N=200 -> padded to 256 -> 2x2 adjacency blocks, 2 occupied per row).
    N, in_channels, hidden_channels, heads = 200, 8, 8, 8

    x = jax.random.normal(k_x, (N, in_channels), jnp.float32)

    # Deterministic bidirectional ring: edge_index[0]=source, [1]=target.
    idx = jnp.arange(N)
    src = jnp.concatenate([idx, idx])
    dst = jnp.concatenate([(idx + 1) % N, (idx - 1) % N])
    edge_index = jnp.stack([src, dst]).astype(jnp.int32)      # [2, 2N]

    params = make_params(k_p, in_channels, hidden_channels, heads)

    out = gat_forward(x, edge_index, params)
    out = jax.block_until_ready(out)

    ref = gat_reference(x, edge_index, params)
    err = float(jnp.max(jnp.abs(out - ref)))

    assert out.shape == (N,)
    assert bool(jnp.all(jnp.isfinite(out)))
    # bf16 intermediates (h1, xW^T) bound the error well below this.
    assert err < 1e-1, f"max abs err vs f32 reference: {err}"
    print("KERNEL_OK")
</pallas_src>

<mosaic_0001>
module attributes {stable_mosaic.version = 11 : i64} {
  func.func @_transform_kernel(%arg0: i32, %arg1: memref<256x9xf32, #tpu.memory_space<vmem>>, %arg2: memref<9x128xf32, #tpu.memory_space<vmem>>, %arg3: memref<128x8xf32, #tpu.memory_space<vmem>>, %arg4: memref<8x128xf32, #tpu.memory_space<vmem>>, %arg5: memref<128x256xbf16, #tpu.memory_space<vmem>>, %arg6: memref<256x8xf32, #tpu.memory_space<vmem>>, %arg7: memref<8x256xf32, #tpu.memory_space<vmem>>) attributes {dimension_semantics = [#tpu.dimension_semantics<parallel>], iteration_bounds = array<i64: 1>, scalar_prefetch = 0 : i64, scratch_operands = 0 : i64, tpu.core_type = #tpu.core_type<tc>, window_params = [{transform_indices = @transform_0, window_bounds = array<i64: 256, 9>}, {pipeline_mode = #tpu.pipeline_mode<synchronous>, transform_indices = @transform_1, window_bounds = array<i64: 9, 128>}, {pipeline_mode = #tpu.pipeline_mode<synchronous>, transform_indices = @transform_2, window_bounds = array<i64: 128, 8>}, {pipeline_mode = #tpu.pipeline_mode<synchronous>, transform_indices = @transform_3, window_bounds = array<i64: 8, 128>}, {transform_indices = @transform_4, window_bounds = array<i64: 128, 256>}, {transform_indices = @transform_5, window_bounds = array<i64: 256, 8>}, {transform_indices = @transform_6, window_bounds = array<i64: 8, 256>}]} {
    %c0 = arith.constant 0 : index
    %c0_0 = arith.constant 0 : index
    %0 = vector.load %arg1[%c0, %c0_0] : memref<256x9xf32, #tpu.memory_space<vmem>>, vector<256x9xf32>
    %c0_1 = arith.constant 0 : index
    %c0_2 = arith.constant 0 : index
    %1 = vector.load %arg2[%c0_1, %c0_2] : memref<9x128xf32, #tpu.memory_space<vmem>>, vector<9x128xf32>
    %cst = arith.constant dense<0.000000e+00> : vector<256x128xf32>
    %2 = tpu.matmul %0, %1, %cst {dimension_numbers = #tpu.dot_dimension_numbers<[1], [0], [0], [1], [0, 0, 1, 1], [], []>} : vector<256x9xf32>, vector<9x128xf32>, vector<256x128xf32> -> vector<256x128xf32>
    %3 = tpu.transpose %2, [1, 0] : vector<256x128xf32> -> vector<128x256xf32>
    %4 = arith.truncf %3 : vector<128x256xf32> to vector<128x256xbf16>
    %c0_3 = arith.constant 0 : index
    %c0_4 = arith.constant 0 : index
    %5 = vector.load %arg5[%c0_3, %c0_4] : memref<128x256xbf16, #tpu.memory_space<vmem>>, vector<128x256xbf16>
    tpu.vector_store %arg5[%c0_3, %c0_4], %4 {strides = array<i32>} : memref<128x256xbf16, #tpu.memory_space<vmem>>, vector<128x256xbf16>,
    %c0_5 = arith.constant 0 : index
    %c0_6 = arith.constant 0 : index
    %6 = vector.load %arg3[%c0_5, %c0_6] : memref<128x8xf32, #tpu.memory_space<vmem>>, vector<128x8xf32>
    %cst_7 = arith.constant dense<0.000000e+00> : vector<256x8xf32>
    %7 = tpu.matmul %2, %6, %cst_7 {dimension_numbers = #tpu.dot_dimension_numbers<[1], [0], [0], [1], [0, 0, 1, 1], [], []>} : vector<256x128xf32>, vector<128x8xf32>, vector<256x8xf32> -> vector<256x8xf32>
    %c0_8 = arith.constant 0 : index
    %c0_9 = arith.constant 0 : index
    %8 = vector.load %arg6[%c0_8, %c0_9] : memref<256x8xf32, #tpu.memory_space<vmem>>, vector<256x8xf32>
    tpu.vector_store %arg6[%c0_8, %c0_9], %7 {strides = array<i32>} : memref<256x8xf32, #tpu.memory_space<vmem>>, vector<256x8xf32>,
    %c0_10 = arith.constant 0 : index
    %c0_11 = arith.constant 0 : index
    %9 = vector.load %arg4[%c0_10, %c0_11] : memref<8x128xf32, #tpu.memory_space<vmem>>, vector<8x128xf32>
    %cst_12 = arith.constant dense<0.000000e+00> : vector<8x256xf32>
    %10 = tpu.matmul %9, %3, %cst_12 {dimension_numbers = #tpu.dot_dimension_numbers<[1], [0], [0], [1], [0, 0, 1, 1], [], []>} : vector<8x128xf32>, vector<128x256xf32>, vector<8x256xf32> -> vector<8x256xf32>
    %c0_13 = arith.constant 0 : index
    %c0_14 = arith.constant 0 : index
    %11 = vector.load %arg7[%c0_13, %c0_14] : memref<8x256xf32, #tpu.memory_space<vmem>>, vector<8x256xf32>
    tpu.vector_store %arg7[%c0_13, %c0_14], %10 {strides = array<i32>} : memref<8x256xf32, #tpu.memory_space<vmem>>, vector<8x256xf32>,
    return
  }
  func.func @transform_0(%arg0: i32) -> (i32, i32) {
    %c0_i32 = arith.constant 0 : i32
    %c0_i32_0 = arith.constant 0 : i32
    return %arg0, %c0_i32 : i32, i32
  }
  func.func @transform_1(%arg0: i32) -> (i32, i32) {
    %c0_i32 = arith.constant 0 : i32
    %c0_i32_0 = arith.constant 0 : i32
    %c0_i32_1 = arith.constant 0 : i32
    return %c0_i32, %c0_i32_0 : i32, i32
  }
  func.func @transform_2(%arg0: i32) -> (i32, i32) {
    %c0_i32 = arith.constant 0 : i32
    %c0_i32_0 = arith.constant 0 : i32
    %c0_i32_1 = arith.constant 0 : i32
    return %c0_i32, %c0_i32_0 : i32, i32
  }
  func.func @transform_3(%arg0: i32) -> (i32, i32) {
    %c0_i32 = arith.constant 0 : i32
    %c0_i32_0 = arith.constant 0 : i32
    %c0_i32_1 = arith.constant 0 : i32
    return %c0_i32, %c0_i32_0 : i32, i32
  }
  func.func @transform_4(%arg0: i32) -> (i32, i32) {
    %c0_i32 = arith.constant 0 : i32
    %c0_i32_0 = arith.constant 0 : i32
    return %c0_i32, %arg0 : i32, i32
  }
  func.func @transform_5(%arg0: i32) -> (i32, i32) {
    %c0_i32 = arith.constant 0 : i32
    %c0_i32_0 = arith.constant 0 : i32
    return %arg0, %c0_i32 : i32, i32
  }
  func.func @transform_6(%arg0: i32) -> (i32, i32) {
    %c0_i32 = arith.constant 0 : i32
    %c0_i32_0 = arith.constant 0 : i32
    return %c0_i32, %arg0 : i32, i32
  }
}

</mosaic_0001>

<bundles_post_ra>
// kernel: tpu_custom_call.1
= control target key start
LH: loop header
LB: loop body
LE: loop exit
PB: predicated region body
PF: predicated region fallthrough
CT: control target
= control target key end

     0   :  { %12 = vsyncpa [#allocation3], 0  ;;  %vm153_vm0 = vcmask 1040384   ;;  %vm56_vm1 = vcmask 72704   ;;  %s1715_s0 = inlined_call_operand.vmem [shape: f32[256,9], index: 0, kind: input, shape index: {}]   ;;  %s1716_s1 = inlined_call_operand.vmem [shape: f32[9,128], index: 1, kind: input, shape index: {}]   ;;  %s1717_s2 = inlined_call_operand.vmem [shape: f32[128,8], index: 2, kind: input, shape index: {}]   ;;  %s1718_s3 = inlined_call_operand.vmem [shape: f32[8,128], index: 3, kind: input, shape index: {}]   ;;  %s1719_s4 = inlined_call_operand.hbm [shape: bf16[128,256], index: 4, kind: output, shape index: {0}]   ;;  %s1720_s5 = inlined_call_operand.vmem [shape: f32[256,8], index: 5, kind: output, shape index: {1}]   ;;  %s1721_s6 = inlined_call_operand.hbm [shape: f32[8,256], index: 6, kind: output, shape index: {2}]  }
   0x1   :  { %v55_v0 = vld [vmem:[%s1716_s1 + $0x8] sm:$0x1]  ;;  %v54_v1 = vld [vmem:[%s1716_s1] sm:$0xff]  ;;  %v24_v4 = vld [vmem:[%s1715_s0 + $0x10] sm:$0xff] }
   0x2   :  { %v22_v2 = vld [vmem:[%s1715_s0] sm:$0xff]  ;;  %1087 = vmatprep.subr.msk.mxu0 %vm153_vm0, %v55_v0  ;;  %v23_v3 = vld [vmem:[%s1715_s0 + $0x8] sm:$0xff]  ;;  %v25_v5 = vld [vmem:[%s1715_s0 + $0x18] sm:$0xff] }
   0x3   :  { %1091 = vmatprep.mubr.msk.f32.mxu0 %vm56_vm1, %v22_v2  ;;  %1088 = vmatpush3.msk.msra.mxu0 %vm153_vm0, %v55_v0  ;;  %v26_v6 = vld [vmem:[%s1715_s0 + $0x20] sm:$0xff]  ;;  %v27_v7 = vld [vmem:[%s1715_s0 + $0x28] sm:$0xff]  ;;  %v28_v8 = vld [vmem:[%s1715_s0 + $0x30] sm:$0xff] }
   0x4   :  { %1089 = vmatprep.subr.mxu0 %v54_v1  ;;  %v573_v9 = vld [vmem:[%s1717_s2 + $0x78] sm:$0xff]  ;;  %v572_v10 = vld [vmem:[%s1717_s2 + $0x70] sm:$0xff]  ;;  %v571_v11 = vld [vmem:[%s1717_s2 + $0x68] sm:$0xff] }
   0x5   :  { %1090 = vmatpush3.msra.mxu0 %v54_v1  ;;  %1139 = vmatprep.subr.mxu1 %v573_v9  ;;  %v29_v12 = vld [vmem:[%s1715_s0 + $0x38] sm:$0xff]  ;;  %v30_v13 = vld [vmem:[%s1715_s0 + $0x40] sm:$0xff] }
   0x6   :  { %1092 = vmatmul.mubr.msk.f32.vlgmr.msra.gmra.mxu0 %vm56_vm1, %v23_v3  ;;  %1140 = vmatpush3.msra.mxu1 %v573_v9  ;;  %v570_v14 = vld [vmem:[%s1717_s2 + $0x60] sm:$0xff] }
   0x7   :  { %1094 = vmatprep.mubr.msk.f32.mxu0 %vm56_vm1, %v24_v4  ;;  %1141 = vmatprep.subr.mxu1 %v572_v10 }
   0x8   :  { %1142 = vmatpush3.msra.mxu1 %v572_v10 }
   0x9   :  { %1143 = vmatprep.subr.mxu1 %v571_v11 }
   0xa   :  { %1095 = vmatmul.mubr.msk.f32.gmra.mxu0 %vm56_vm1, %v25_v5 }
   0xb   :  { %1097 = vmatprep.mubr.msk.f32.mxu0 %vm56_vm1, %v26_v6 }
   0xe   :  { %1098 = vmatmul.mubr.msk.f32.gmra.mxu0 %vm56_vm1, %v27_v7 }
   0xf   :  { %1100 = vmatprep.mubr.msk.f32.mxu0 %vm56_vm1, %v28_v8 }
  0x10   :  { %13 = vsyncpa [#allocation5], 0  ;;  %1144 = vmatpush3.msra.mxu1 %v571_v11  ;;  %v569_v15 = vld [vmem:[%s1717_s2 + $0x58] sm:$0xff]  ;;  %v31_v16 = vld [vmem:[%s1715_s0 + $0x48] sm:$0xff]  ;;  %vm799_vm2 = vcmask 64512   ;;  %s1269_s30 = smov [#allocation2]  }
  0x11   :  { %1145 = vmatprep.subr.mxu1 %v570_v14  ;;  %v32_v17 = vld [vmem:[%s1715_s0 + $0x50] sm:$0xff]  ;;  %v567_v19 = vld [vmem:[%s1717_s2 + $0x48] sm:$0xff]  ;;  %v33_v20 = vld [vmem:[%s1715_s0 + $0x58] sm:$0xff]  ;;  %s911_s1 = sshll.u32 %s1269_s30, 4  ;;  %s912_s1 = int_to_ptr.vmem [resolvable:$true] %s911_s1 }
  0x12   :  { %1101 = vmatmul.mubr.msk.f32.gmra.mxu0 %vm56_vm1, %v29_v12  ;;  %1146 = vmatpush3.msra.mxu1 %v570_v14  ;;  %v568_v18 = vld [vmem:[%s1717_s2 + $0x50] sm:$0xff]  ;;  %v34_v21 = vld [vmem:[%s1715_s0 + $0x60] sm:$0xff]  ;;  %v565_v23 = vld [vmem:[%s1717_s2 + $0x38] sm:$0xff]  ;;  %s1224_s7 = scalar_lea.vmem %s912_s1, 2048  ;;  %p1229_p1 = scmp.lt.s32.totalorder %s912_s1, %s912_s1 }
  0x13   :  { %1103 = vmatprep.mubr.msk.f32.mxu0 %vm56_vm1, %v30_v13  ;;  %1147 = vmatprep.subr.mxu1 %v569_v15  ;;  %v566_v22 = vld [vmem:[%s1717_s2 + $0x40] sm:$0xff]  ;;  %v35_v24 = vld [vmem:[%s1715_s0 + $0x68] sm:$0xff]  ;;  %v36_v25 = vld [vmem:[%s1715_s0 + $0x70] sm:$0xff]  ;;  %p1225_p0 = scmp.ne.s32.totalorder %s912_s1, %s1224_s7  ;;  %p1230_p2 = scmp.lt.s32.totalorder %s1224_s7, %s1224_s7 }
  0x14   :  { %1148 = vmatpush3.msra.mxu1 %v569_v15  ;;  %v564_v26 = vld [vmem:[%s1717_s2 + $0x30] sm:$0xff]  ;;  %v563_v27 = vld [vmem:[%s1717_s2 + $0x28] sm:$0xff]  ;;  %v37_v28 = vld [vmem:[%s1715_s0 + $0x78] sm:$0xff] }
  0x15   :  { %1149 = vmatprep.subr.mxu1 %v568_v18  ;;  %v38_v29 = vld [vmem:[%s1715_s0 + $0x80] sm:$0xff]  ;;  %v561_v31 = vld [vmem:[%s1717_s2 + $0x18] sm:$0xff]  ;;  %v39_v32 = vld [vmem:[%s1715_s0 + $0x88] sm:$0xff]  ;;  %p1231_p3 = por %p1230_p2, %p1229_p1 }
  0x16   :  { %1104 = vmatmul.mubr.msk.f32.gmra.mxu0 %vm56_vm1, %v31_v16  ;;  %1150 = vmatpush3.msra.mxu1 %v568_v18  ;;  %v562_v30 = vld [vmem:[%s1717_s2 + $0x20] sm:$0xff]  ;;  %v40_v33 = vld [vmem:[%s1715_s0 + $0x90] sm:$0xff]  ;;  %v41_v35 = vld [vmem:[%s1715_s0 + $0x98] sm:$0xff]  ;;  %v1268_v18 = vmov 0.0  }
  0x17   :  { %1106 = vmatprep.mubr.msk.f32.mxu0 %vm56_vm1, %v32_v17  ;;  %1151 = vmatprep.subr.mxu1 %v567_v19  ;;  %v560_v34 = vld [vmem:[%s1717_s2 + $0x10] sm:$0xff]  ;;  %v42_v36 = vld [vmem:[%s1715_s0 + $0xa0] sm:$0xff]  ;;  %v43_v37 = vld [vmem:[%s1715_s0 + $0xa8] sm:$0xff]  ;;  %p1232_p4 = pnand %p1231_p3, %p1225_p0 }
  0x18   :  { %1152 = vmatpush3.msra.mxu1 %v567_v19  ;;  %v44_v38 = vld [vmem:[%s1715_s0 + $0xb0] sm:$0xff]  ;;  %v45_v39 = vld [vmem:[%s1715_s0 + $0xb8] sm:$0xff]  ;;  %v46_v40 = vld [vmem:[%s1715_s0 + $0xc0] sm:$0xff] }
  0x19   :  { %1153 = vmatprep.subr.mxu1 %v566_v22  ;;  %v47_v41 = vld [vmem:[%s1715_s0 + $0xc8] sm:$0xff]  ;;  %v48_v42 = vld [vmem:[%s1715_s0 + $0xd0] sm:$0xff]  ;;  %v49_v43 = vld [vmem:[%s1715_s0 + $0xd8] sm:$0xff] }
  0x1a   :  { %1107 = vmatmul.mubr.msk.f32.gmra.mxu0 %vm56_vm1, %v33_v20  ;;  %1154 = vmatpush3.msra.mxu1 %v566_v22  ;;  %v50_v44 = vld [vmem:[%s1715_s0 + $0xe0] sm:$0xff]  ;;  %v51_v45 = vld [vmem:[%s1715_s0 + $0xe8] sm:$0xff]  ;;  %v52_v46 = vld [vmem:[%s1715_s0 + $0xf0] sm:$0xff] }
  0x1b   :  { %1109 = vmatprep.mubr.msk.f32.mxu0 %vm56_vm1, %v34_v21  ;;  %1155 = vmatprep.subr.mxu1 %v565_v23  ;;  %v53_v47 = vld [vmem:[%s1715_s0 + $0xf8] sm:$0xff]  ;;  %v559_v48 = vld [vmem:[%s1717_s2 + $0x8] sm:$0xff]  ;;  %v558_v49 = vld [vmem:[%s1717_s2] sm:$0xff] }
  0x1c   :  { %1156 = vmatpush3.msra.mxu1 %v565_v23 }
  0x1d   :  { %1157 = vmatprep.subr.mxu1 %v564_v26 }
  0x1e   :  { %1110 = vmatmul.mubr.msk.f32.gmra.mxu0 %vm56_vm1, %v35_v24  ;;  %1158 = vmatpush3.msra.mxu1 %v564_v26 }
  0x1f   :  { %1112 = vmatprep.mubr.msk.f32.mxu0 %vm56_vm1, %v36_v25  ;;  %1159 = vmatprep.subr.mxu1 %v563_v27 }
  0x20   :  { %1160 = vmatpush3.msra.mxu1 %v563_v27 }
  0x21   :  { %1161 = vmatprep.subr.mxu1 %v562_v30 }
  0x22   :  { %1113 = vmatmul.mubr.msk.f32.gmra.mxu0 %vm56_vm1, %v37_v28  ;;  %1162 = vmatpush3.msra.mxu1 %v562_v30 }
  0x23   :  { %1115 = vmatprep.mubr.msk.f32.mxu0 %vm56_vm1, %v38_v29  ;;  %1163 = vmatprep.subr.mxu1 %v561_v31 }
  0x24   :  { %1164 = vmatpush3.msra.mxu1 %v561_v31 }
  0x25   :  { %1165 = vmatprep.subr.mxu1 %v560_v34 }
  0x26   :  { %1116 = vmatmul.mubr.msk.f32.gmra.mxu0 %vm56_vm1, %v39_v32  ;;  %1166 = vmatpush3.msra.mxu1 %v560_v34 }
  0x27   :  { %1118 = vmatprep.mubr.msk.f32.mxu0 %vm56_vm1, %v40_v33  ;;  %1167 = vmatprep.subr.mxu1 %v559_v48 }
  0x28   :  { %1168 = vmatpush3.msra.mxu1 %v559_v48 }
  0x29   :  { %1169 = vmatprep.subr.mxu1 %v558_v49 }
  0x2a   :  { %1119 = vmatmul.mubr.msk.f32.gmra.mxu0 %vm56_vm1, %v41_v35  ;;  %1170 = vmatpush3.msra.mxu1 %v558_v49 }
  0x2b   :  { %1121 = vmatprep.mubr.msk.f32.mxu0 %vm56_vm1, %v42_v36 }
  0x2e   :  { %1122 = vmatmul.mubr.msk.f32.gmra.mxu0 %vm56_vm1, %v43_v37 }
  0x2f   :  { %1124 = vmatprep.mubr.msk.f32.mxu0 %vm56_vm1, %v44_v38 }
  0x32   :  { %1125 = vmatmul.mubr.msk.f32.gmra.mxu0 %vm56_vm1, %v45_v39 }
  0x33   :  { %1127 = vmatprep.mubr.msk.f32.mxu0 %vm56_vm1, %v46_v40 }
  0x36   :  { %1128 = vmatmul.mubr.msk.f32.gmra.mxu0 %vm56_vm1, %v47_v41 }
  0x37   :  { %1130 = vmatprep.mubr.msk.f32.mxu0 %vm56_vm1, %v48_v42 }
  0x3a   :  { %1131 = vmatmul.mubr.msk.f32.gmra.mxu0 %vm56_vm1, %v49_v43 }
  0x3b   :  { %1133 = vmatprep.mubr.msk.f32.mxu0 %vm56_vm1, %v50_v44 }
  0x3e   :  { %1134 = vmatmul.mubr.msk.f32.gmra.mxu0 %vm56_vm1, %v51_v45 }
  0x3f   :  { %1136 = vmatprep.mubr.msk.f32.mxu0 %vm56_vm1, %v52_v46 }
  0x42   :  { %1137 = vmatmul.mubr.msk.f32.gmra.mxu0 %vm56_vm1, %v53_v47 }
  0x43   :  { %897 = vmatprep.mubr.f32.mxu0 %v1268_v18 }
  0xc6   :  { %v1093_v50 = vpop.f32.mrf.mxu0 }
  0xc8   :  { %v223_v51 = vpop.f32.mrf.mxu0 }
  0xc9   :  { %382 = vxpose.xlu1.b32.start [1/16] %v223_v51, 128  ;;  %1171 = vmatprep.mubr.f32.mxu1 %v223_v51 }
  0xca   :  { %v1096_v52 = vpop.f32.mrf.mxu0  ;;  %1172 = vmatmul.mubr.f32.vlgmr.msra.gmra.mxu1 %v1093_v50 }
  0xcc   :  { %v233_v53 = vpop.f32.mrf.mxu0 }
  0xcd   :  { %383 = vxpose.xlu1.b32.cont [2/16] %v1093_v50, 128  ;;  %1174 = vmatprep.mubr.f32.mxu1 %v233_v53 }
  0xce   :  { %v1099_v54 = vpop.f32.mrf.mxu0  ;;  %1175 = vmatmul.mubr.f32.gmra.mxu1 %v1096_v52 }
  0xd0   :  { %v243_v55 = vpop.f32.mrf.mxu0 }
  0xd1   :  { %384 = vxpose.xlu1.b32.cont [3/16] %v233_v53, 128  ;;  %1177 = vmatprep.mubr.f32.mxu1 %v243_v55 }
  0xd2   :  { %v1102_v56 = vpop.f32.mrf.mxu0  ;;  %1178 = vmatmul.mubr.f32.gmra.mxu1 %v1099_v54 }
  0xd4   :  { %v253_v57 = vpop.f32.mrf.mxu0 }
  0xd5   :  { %385 = vxpose.xlu1.b32.cont [4/16] %v1096_v52, 128  ;;  %1180 = vmatprep.mubr.f32.mxu1 %v253_v57 }
  0xd6   :  { %v1105_v58 = vpop.f32.mrf.mxu0  ;;  %1181 = vmatmul.mubr.f32.gmra.mxu1 %v1102_v56 }
  0xd8   :  { %v263_v59 = vpop.f32.mrf.mxu0 }
  0xd9   :  { %386 = vxpose.xlu1.b32.cont [5/16] %v243_v55, 128  ;;  %1183 = vmatprep.mubr.f32.mxu1 %v263_v59 }
  0xda   :  { %v1108_v60 = vpop.f32.mrf.mxu0  ;;  %1184 = vmatmul.mubr.f32.gmra.mxu1 %v1105_v58 }
  0xdc   :  { %v273_v61 = vpop.f32.mrf.mxu0 }
  0xdd   :  { %387 = vxpose.xlu1.b32.cont [6/16] %v1099_v54, 128  ;;  %1186 = vmatprep.mubr.f32.mxu1 %v273_v61 }
  0xde   :  { %v1111_v62 = vpop.f32.mrf.mxu0  ;;  %1187 = vmatmul.mubr.f32.gmra.mxu1 %v1108_v60 }
  0xe0   :  { %v283_v63 = vpop.f32.mrf.mxu0 }
  0xe1   :  { %388 = vxpose.xlu1.b32.cont [7/16] %v253_v57, 128  ;;  %1189 = vmatprep.mubr.f32.mxu1 %v283_v63 }
  0xe2   :  { %v1114_v0 = vpop.f32.mrf.mxu0  ;;  %1190 = vmatmul.mubr.f32.gmra.mxu1 %v1111_v62 }
  0xe4   :  { %v293_v1 = vpop.f32.mrf.mxu0 }
  0xe5   :  { %389 = vxpose.xlu1.b32.cont [8/16] %v1102_v56, 128  ;;  %1192 = vmatprep.mubr.f32.mxu1 %v293_v1 }
  0xe6   :  { %v1117_v2 = vpop.f32.mrf.mxu0  ;;  %1193 = vmatmul.mubr.f32.gmra.mxu1 %v1114_v0 }
  0xe8   :  { %v303_v3 = vpop.f32.mrf.mxu0 }
  0xe9   :  { %390 = vxpose.xlu1.b32.cont [9/16] %v263_v59, 128  ;;  %414 = vxpose.xlu0.b32.start [1/16] %v303_v3, 128 }
  0xea   :  { %1195 = vmatprep.mubr.f32.mxu1 %v303_v3  ;;  %v1120_v4 = vpop.f32.mrf.mxu0 }
  0xeb   :  { %1196 = vmatmul.mubr.f32.gmra.mxu1 %v1117_v2 }
  0xec   :  { %v313_v5 = vpop.f32.mrf.mxu0 }
  0xed   :  { %391 = vxpose.xlu1.b32.cont [10/16] %v1105_v58, 128  ;;  %415 = vxpose.xlu0.b32.cont [2/16] %v1117_v2, 128 }
  0xee   :  { %1198 = vmatprep.mubr.f32.mxu1 %v313_v5  ;;  %v1123_v6 = vpop.f32.mrf.mxu0 }
  0xef   :  { %1199 = vmatmul.mubr.f32.gmra.mxu1 %v1120_v4 }
  0xf0   :  { %v323_v7 = vpop.f32.mrf.mxu0 }
  0xf1   :  { %392 = vxpose.xlu1.b32.cont [11/16] %v273_v61, 128  ;;  %416 = vxpose.xlu0.b32.cont [3/16] %v313_v5, 128 }
  0xf2   :  { %1201 = vmatprep.mubr.f32.mxu1 %v323_v7  ;;  %v1126_v8 = vpop.f32.mrf.mxu0 }
  0xf3   :  { %1202 = vmatmul.mubr.f32.gmra.mxu1 %v1123_v6 }
  0xf4   :  { %v333_v9 = vpop.f32.mrf.mxu0 }
  0xf5   :  { %393 = vxpose.xlu1.b32.cont [12/16] %v1108_v60, 128  ;;  %417 = vxpose.xlu0.b32.cont [4/16] %v1120_v4, 128 }
  0xf6   :  { %1204 = vmatprep.mubr.f32.mxu1 %v333_v9  ;;  %v1129_v10 = vpop.f32.mrf.mxu0 }
  0xf7   :  { %1205 = vmatmul.mubr.f32.gmra.mxu1 %v1126_v8 }
  0xf8   :  { %v343_v11 = vpop.f32.mrf.mxu0 }
  0xf9   :  { %394 = vxpose.xlu1.b32.cont [13/16] %v283_v63, 128  ;;  %418 = vxpose.xlu0.b32.cont [5/16] %v323_v7, 128 }
  0xfa   :  { %1207 = vmatprep.mubr.f32.mxu1 %v343_v11  ;;  %v1132_v12 = vpop.f32.mrf.mxu0 }
  0xfb   :  { %1208 = vmatmul.mubr.f32.gmra.mxu1 %v1129_v10 }
  0xfc   :  { %v353_v13 = vpop.f32.mrf.mxu0 }
  0xfd   :  { %395 = vxpose.xlu1.b32.cont [14/16] %v1111_v62, 128  ;;  %419 = vxpose.xlu0.b32.cont [6/16] %v1123_v6, 128 }
  0xfe   :  { %1210 = vmatprep.mubr.f32.mxu1 %v353_v13  ;;  %v1135_v14 = vpop.f32.mrf.mxu0 }
  0xff   :  { %1211 = vmatmul.mubr.f32.gmra.mxu1 %v1132_v12 }
 0x100   :  { %v363_v15 = vpop.f32.mrf.mxu0 }
 0x101   :  { %396 = vxpose.xlu1.b32.cont [15/16] %v293_v1, 128  ;;  %420 = vxpose.xlu0.b32.cont [7/16] %v333_v9, 128 }
 0x102   :  { %1213 = vmatprep.mubr.f32.mxu1 %v363_v15  ;;  %v1138_v16 = vpop.f32.mrf.mxu0 }
 0x103   :  { %1214 = vmatmul.mubr.f32.gmra.mxu1 %v1135_v14 }
 0x104   :  { %v373_v17 = vpop.f32.mrf.mxu0 }
 0x105   :  { %397 = vxpose.xlu1.b32.end [16/16] %v1114_v0, 128  ;;  %421 = vxpose.xlu0.b32.cont [8/16] %v1126_v8, 128 }
 0x106   :  { %1216 = vmatprep.mubr.f32.mxu1 %v373_v17 }
 0x107   :  { %1217 = vmatmul.mubr.f32.gmra.mxu1 %v1138_v16 }
 0x109   :  { %422 = vxpose.xlu0.b32.cont [9/16] %v343_v11, 128 }
 0x10d   :  { %423 = vxpose.xlu0.b32.cont [10/16] %v1129_v10, 128 }
 0x111   :  { %424 = vxpose.xlu0.b32.cont [11/16] %v353_v13, 128 }
 0x115   :  { %425 = vxpose.xlu0.b32.cont [12/16] %v1132_v12, 128 }
 0x119   :  { %426 = vxpose.xlu0.b32.cont [13/16] %v363_v15, 128 }
 0x11d   :  { %427 = vxpose.xlu0.b32.cont [14/16] %v1135_v14, 128 }
 0x121   :  { %428 = vxpose.xlu0.b32.cont [15/16] %v373_v17, 128 }
 0x125   :  { %429 = vxpose.xlu0.b32.end [16/16] %v1138_v16, 128 }
 0x145   :  { %v1490_v19 = vpop.trf.xlu1 }
 0x149   :  { %v1492_v20 = vpop.trf.xlu1 }
 0x14d   :  { %v1494_v21 = vpop.trf.xlu1 }
 0x151   :  { %v1496_v22 = vpop.trf.xlu1 }
 0x155   :  { %v1498_v23 = vpop.trf.xlu1 }
 0x159   :  { %v1500_v24 = vpop.trf.xlu1 }
 0x15d   :  { %v1508_v28 = vpop.trf.xlu1 }
 0x161   :  { %v1516_v32 = vpop.trf.xlu1 }
 0x165   :  { %v1502_v25 = vpop.trf.xlu0  ;;  %v1524_v36 = vpop.trf.xlu1 }
 0x166   :  { %v989_v26 = vpack.c.bf16 %v1502_v25, %v1490_v19 }
 0x168   :  { %542 = vst [vmem:[#allocation2] sm:$0xff] %v989_v26 }
 0x169   :  { %v1506_v27 = vpop.trf.xlu0  ;;  %v1532_v40 = vpop.trf.xlu1 }
 0x16a   :  { %v990_v29 = vpack.c.bf16 %v1506_v27, %v1492_v20 }
 0x16c   :  { %543 = vst [vmem:[#allocation2 + $0x8] sm:$0xff] %v990_v29 }
 0x16d   :  { %v1512_v30 = vpop.trf.xlu0  ;;  %v1540_v44 = vpop.trf.xlu1 }
 0x16e   :  { %v991_v31 = vpack.c.bf16 %v1512_v30, %v1494_v21 }
 0x170   :  { %544 = vst [vmem:[#allocation2 + $0x10] sm:$0xff] %v991_v31 }
 0x171   :  { %v1518_v33 = vpop.trf.xlu0  ;;  %v1548_v48 = vpop.trf.xlu1 }
 0x172   :  { %v992_v34 = vpack.c.bf16 %v1518_v33, %v1496_v22 }
 0x174   :  { %545 = vst [vmem:[#allocation2 + $0x18] sm:$0xff] %v992_v34 }
 0x175   :  { %v1522_v35 = vpop.trf.xlu0  ;;  %v410_v54 = vpop.trf.xlu1 }
 0x176   :  { %v993_v37 = vpack.c.bf16 %v1522_v35, %v1498_v23 }
 0x178   :  { %546 = vst [vmem:[#allocation2 + $0x20] sm:$0xff] %v993_v37 }
 0x179   :  { %v1528_v38 = vpop.trf.xlu0  ;;  %v411_v61 = vpop.trf.xlu1 }
 0x17a   :  { %v994_v39 = vpack.c.bf16 %v1528_v38, %v1500_v24 }
 0x17c   :  { %547 = vst [vmem:[#allocation2 + $0x28] sm:$0xff] %v994_v39 }
 0x17d   :  { %v1534_v41 = vpop.trf.xlu0  ;;  %v412_v4 = vpop.trf.xlu1 }
 0x17e   :  { %v995_v42 = vpack.c.bf16 %v1534_v41, %v1508_v28 }
 0x180   :  { %548 = vst [vmem:[#allocation2 + $0x30] sm:$0xff] %v995_v42 }
 0x181   :  { %v1538_v43 = vpop.trf.xlu0  ;;  %v413_v11 = vpop.trf.xlu1 }
 0x182   :  { %v996_v45 = vpack.c.bf16 %v1538_v43, %v1516_v32 }
 0x184   :  { %549 = vst [vmem:[#allocation2 + $0x38] sm:$0xff] %v996_v45 }
 0x185   :  { %v1544_v46 = vpop.trf.xlu0 }
 0x186   :  { %v997_v47 = vpack.c.bf16 %v1544_v46, %v1524_v36 }
 0x188   :  { %550 = vst [vmem:[#allocation2 + $0x40] sm:$0xff] %v997_v47 }
 0x189   :  { %v1550_v49 = vpop.trf.xlu0 }
 0x18a   :  { %v998_v50 = vpack.c.bf16 %v1550_v49, %v1532_v40  ;;  %v1173_v51 = vpop.f32.mrf.mxu1 }
 0x18b   :  { %801 = vst.msk [vmem:[%s1720_s5 + $0x8] sm:$0xff] %vm799_vm2, %v1173_v51 }
 0x18c   :  { %551 = vst [vmem:[#allocation2 + $0x48] sm:$0xff] %v998_v50  ;;  %v640_v52 = vpop.f32.mrf.mxu1 }
 0x18d   :  { %800 = vst.msk [vmem:[%s1720_s5] sm:$0xff] %vm799_vm2, %v640_v52  ;;  %v440_v53 = vpop.trf.xlu0 }
 0x18e   :  { %v999_v55 = vpack.c.bf16 %v440_v53, %v1540_v44  ;;  %v1176_v56 = vpop.f32.mrf.mxu1 }
 0x18f   :  { %803 = vst.msk [vmem:[%s1720_s5 + $0x18] sm:$0xff] %vm799_vm2, %v1176_v56 }
 0x190   :  { %552 = vst [vmem:[#allocation2 + $0x50] sm:$0xff] %v999_v55  ;;  %v650_v57 = vpop.f32.mrf.mxu1 }
 0x191   :  { %802 = vst.msk [vmem:[%s1720_s5 + $0x10] sm:$0xff] %vm799_vm2, %v650_v57  ;;  %v441_v58 = vpop.trf.xlu0 }
 0x192   :  { %v1000_v59 = vpack.c.bf16 %v441_v58, %v1548_v48  ;;  %v1179_v60 = vpop.f32.mrf.mxu1 }
 0x193   :  { %805 = vst.msk [vmem:[%s1720_s5 + $0x28] sm:$0xff] %vm799_vm2, %v1179_v60 }
 0x194   :  { %553 = vst [vmem:[#allocation2 + $0x58] sm:$0xff] %v1000_v59  ;;  %v660_v62 = vpop.f32.mrf.mxu1 }
 0x195   :  { %804 = vst.msk [vmem:[%s1720_s5 + $0x20] sm:$0xff] %vm799_vm2, %v660_v62  ;;  %v442_v63 = vpop.trf.xlu0 }
 0x196   :  { %v1001_v0 = vpack.c.bf16 %v442_v63, %v410_v54  ;;  %v1182_v1 = vpop.f32.mrf.mxu1 }
 0x197   :  { %807 = vst.msk [vmem:[%s1720_s5 + $0x38] sm:$0xff] %vm799_vm2, %v1182_v1 }
 0x198   :  { %554 = vst [vmem:[#allocation2 + $0x60] sm:$0xff] %v1001_v0  ;;  %v670_v2 = vpop.f32.mrf.mxu1 }
 0x199   :  { %806 = vst.msk [vmem:[%s1720_s5 + $0x30] sm:$0xff] %vm799_vm2, %v670_v2  ;;  %v443_v3 = vpop.trf.xlu0 }
 0x19a   :  { %v1002_v5 = vpack.c.bf16 %v443_v3, %v411_v61  ;;  %v1185_v6 = vpop.f32.mrf.mxu1 }
 0x19b   :  { %809 = vst.msk [vmem:[%s1720_s5 + $0x48] sm:$0xff] %vm799_vm2, %v1185_v6 }
 0x19c   :  { %555 = vst [vmem:[#allocation2 + $0x68] sm:$0xff] %v1002_v5  ;;  %v680_v7 = vpop.f32.mrf.mxu1 }
 0x19d   :  { %808 = vst.msk [vmem:[%s1720_s5 + $0x40] sm:$0xff] %vm799_vm2, %v680_v7  ;;  %v444_v8 = vpop.trf.xlu0 }
 0x19e   :  { %v1003_v9 = vpack.c.bf16 %v444_v8, %v412_v4  ;;  %v1188_v10 = vpop.f32.mrf.mxu1 }
 0x19f   :  { %811 = vst.msk [vmem:[%s1720_s5 + $0x58] sm:$0xff] %vm799_vm2, %v1188_v10 }
 0x1a0   :  { %556 = vst [vmem:[#allocation2 + $0x70] sm:$0xff] %v1003_v9  ;;  %v690_v12 = vpop.f32.mrf.mxu1 }
 0x1a1   :  { %810 = vst.msk [vmem:[%s1720_s5 + $0x50] sm:$0xff] %vm799_vm2, %v690_v12  ;;  %v445_v13 = vpop.trf.xlu0 }
 0x1a2   :  { %v1004_v14 = vpack.c.bf16 %v445_v13, %v413_v11  ;;  %v1191_v15 = vpop.f32.mrf.mxu1  ;;  %833 = vmatprep.subr.mxu0 %v445_v13 }
 0x1a3   :  { %813 = vst.msk [vmem:[%s1720_s5 + $0x68] sm:$0xff] %vm799_vm2, %v1191_v15  ;;  %834 = vmatpush1.msra.mxu0 %v413_v11 }
 0x1a4   :  { %557 = vst [vmem:[#allocation2 + $0x78] sm:$0xff] %v1004_v14  ;;  %v700_v16 = vpop.f32.mrf.mxu1  ;;  %835 = vmatprep.subr.mxu0 %v444_v8 }
 0x1a5   :  { %812 = vst.msk [vmem:[%s1720_s5 + $0x60] sm:$0xff] %vm799_vm2, %v700_v16  ;;  %836 = vmatpush1.msra.mxu0 %v412_v4 }
 0x1a6   :  { %v1194_v17 = vpop.f32.mrf.mxu1  ;;  %837 = vmatprep.subr.mxu0 %v443_v3 }
 0x1a7   :  { %815 = vst.msk [vmem:[%s1720_s5 + $0x78] sm:$0xff] %vm799_vm2, %v1194_v17  ;;  %838 = vmatpush1.msra.mxu0 %v411_v61 }
 0x1a8   :  { %v710_v18 = vpop.f32.mrf.mxu1  ;;  %839 = vmatprep.subr.mxu0 %v442_v63 }
 0x1a9   :  { %814 = vst.msk [vmem:[%s1720_s5 + $0x70] sm:$0xff] %vm799_vm2, %v710_v18  ;;  %840 = vmatpush1.msra.mxu0 %v410_v54 }
 0x1aa   :  { %841 = vmatprep.subr.mxu0 %v441_v58 }
 0x1ab   :  { %v1197_v26 = vpop.f32.mrf.mxu1  ;;  %842 = vmatpush1.msra.mxu0 %v1548_v48 }
 0x1ac   :  { %817 = vst.msk [vmem:[%s1720_s5 + $0x88] sm:$0xff] %vm799_vm2, %v1197_v26  ;;  %843 = vmatprep.subr.mxu0 %v440_v53 }
 0x1ad   :  { %v720_v29 = vpop.f32.mrf.mxu1  ;;  %844 = vmatpush1.msra.mxu0 %v1540_v44 }
 0x1ae   :  { %816 = vst.msk [vmem:[%s1720_s5 + $0x80] sm:$0xff] %vm799_vm2, %v720_v29  ;;  %845 = vmatprep.subr.mxu0 %v1550_v49 }
 0x1af   :  { %v1200_v31 = vpop.f32.mrf.mxu1  ;;  %846 = vmatpush1.msra.mxu0 %v1532_v40 }
 0x1b0   :  { %819 = vst.msk [vmem:[%s1720_s5 + $0x98] sm:$0xff] %vm799_vm2, %v1200_v31  ;;  %847 = vmatprep.subr.mxu0 %v1544_v46 }
 0x1b1   :  { %v730_v34 = vpop.f32.mrf.mxu1  ;;  %848 = vmatpush1.msra.mxu0 %v1524_v36 }
 0x1b2   :  { %818 = vst.msk [vmem:[%s1720_s5 + $0x90] sm:$0xff] %vm799_vm2, %v730_v34  ;;  %849 = vmatprep.subr.mxu0 %v1538_v43 }
 0x1b3   :  { %850 = vmatpush1.msra.mxu0 %v1516_v32  ;;  %v1203_v37 = vpop.f32.mrf.mxu1 }
 0x1b4   :  { %851 = vmatprep.subr.mxu0 %v1534_v41  ;;  %821 = vst.msk [vmem:[%s1720_s5 + $0xa8] sm:$0xff] %vm799_vm2, %v1203_v37 }
 0x1b5   :  { %852 = vmatpush1.msra.mxu0 %v1508_v28  ;;  %v740_v36 = vpop.f32.mrf.mxu1 }
 0x1b6   :  { %853 = vmatprep.subr.mxu0 %v1528_v38  ;;  %820 = vst.msk [vmem:[%s1720_s5 + $0xa0] sm:$0xff] %vm799_vm2, %v740_v36 }
 0x1b7   :  { %854 = vmatpush1.msra.mxu0 %v1500_v24  ;;  %v1206_v32 = vpop.f32.mrf.mxu1 }
 0x1b8   :  { %855 = vmatprep.subr.mxu0 %v1522_v35  ;;  %823 = vst.msk [vmem:[%s1720_s5 + $0xb8] sm:$0xff] %vm799_vm2, %v1206_v32 }
 0x1b9   :  { %856 = vmatpush1.msra.mxu0 %v1498_v23  ;;  %v750_v28 = vpop.f32.mrf.mxu1 }
 0x1ba   :  { %857 = vmatprep.subr.mxu0 %v1518_v33  ;;  %822 = vst.msk [vmem:[%s1720_s5 + $0xb0] sm:$0xff] %vm799_vm2, %v750_v28 }
 0x1bb   :  { %858 = vmatpush1.msra.mxu0 %v1496_v22  ;;  %v1209_v24 = vpop.f32.mrf.mxu1 }
 0x1bc   :  { %859 = vmatprep.subr.mxu0 %v1512_v30  ;;  %825 = vst.msk [vmem:[%s1720_s5 + $0xc8] sm:$0xff] %vm799_vm2, %v1209_v24  ;;  %v832_v30 = vld [vmem:[%s1718_s3] sm:$0xff] }
 0x1bd   :  { %860 = vmatpush1.msra.mxu0 %v1494_v21  ;;  %v760_v23 = vpop.f32.mrf.mxu1 }
 0x1be   :  { %861 = vmatprep.subr.mxu0 %v1506_v27  ;;  %824 = vst.msk [vmem:[%s1720_s5 + $0xc0] sm:$0xff] %vm799_vm2, %v760_v23 }
 0x1bf   :  { %862 = vmatpush1.msra.mxu0 %v1492_v20  ;;  %v1212_v22 = vpop.f32.mrf.mxu1 }
 0x1c0   :  { %863 = vmatprep.subr.mxu0 %v1502_v25  ;;  %827 = vst.msk [vmem:[%s1720_s5 + $0xd8] sm:$0xff] %vm799_vm2, %v1212_v22 }
 0x1c1   :  { %864 = vmatpush1.msra.mxu0 %v1490_v19  ;;  %v770_v21 = vpop.f32.mrf.mxu1 }
 0x1c2   :  { %826 = vst.msk [vmem:[%s1720_s5 + $0xd0] sm:$0xff] %vm799_vm2, %v770_v21  ;;  %898 = vmatmul.mubr.f32.vlgmr.msra.gmra.mxu0 %v832_v30 }
 0x1c3   :  { %v1215_v20 = vpop.f32.mrf.mxu1 }
 0x1c4   :  { %829 = vst.msk [vmem:[%s1720_s5 + $0xe8] sm:$0xff] %vm799_vm2, %v1215_v20 }
 0x1c5   :  { %v780_v25 = vpop.f32.mrf.mxu1 }
 0x1c6   :  { %828 = vst.msk [vmem:[%s1720_s5 + $0xe0] sm:$0xff] %vm799_vm2, %v780_v25 }
 0x1c7   :  { %v1218_v19 = vpop.f32.mrf.mxu1 }
 0x1c8   :  { %831 = vst.msk [vmem:[%s1720_s5 + $0xf8] sm:$0xff] %vm799_vm2, %v1218_v19 }
 0x1c9   :  { %v790_v27 = vpop.f32.mrf.mxu1 }
 0x1ca   :  { %830 = vst.msk [vmem:[%s1720_s5 + $0xf0] sm:$0xff] %vm799_vm2, %v790_v27 }
 0x1cb   :  { %1235 = shalt.err (!%p1232_p4)
}
 0x1cc   :  { %s1270_s8 = smov 128   ;;  %s1271_s9 = smov 8  }
 0x1cd   :  { %917 = dma.vmem_to_hbm [thread:$0]  %s912_s1, 2048, %s1719_s4, [#allocation3], %s1270_s8, %s1270_s8, %s1271_s9  }
 0x1ce   :  { %s1272_s12 = smov [#allocation4]  }
 0x1cf   :  { %s926_s13 = sshll.u32 %s1272_s12, 4  ;;  %s927_s13 = int_to_ptr.vmem [resolvable:$true] %s926_s13 }
 0x1d0   :  { %s1244_s5 = scalar_lea.vmem %s927_s13, 256  ;;  %p1249_p6 = scmp.lt.s32.totalorder %s927_s13, %s927_s13 }
 0x1d1   :  { %p1245_p5 = scmp.ne.s32.totalorder %s927_s13, %s1244_s5  ;;  %p1250_p7 = scmp.lt.s32.totalorder %s1244_s5, %s1244_s5 }
 0x1d3   :  { %p1251_p8 = por %p1250_p7, %p1249_p6 }
 0x1d5   :  { %p1252_p9 = pnand %p1251_p8, %p1245_p5 }
 0x282   :  { %v899_v33 = vpop.f32.mrf.mxu0 }
 0x283   :  { %904 = vst [vmem:[#allocation4] sm:$0xff] %v899_v33 }
 0x284   :  { %v901_v35 = vpop.f32.mrf.mxu0 }
 0x285   :  { %905 = vst [vmem:[#allocation4 + $0x8] sm:$0xff] %v901_v35 }
 0x286   :  { %1255 = shalt.err (!%p1252_p9)
}
 0x287   :  { %929 = dma.vmem_to_hbm [thread:$0]  %s927_s13, 256, %s1721_s6, [#allocation5]  }
 0x288   :  { %1264 = dma.done.wait [#allocation3], 2048  }
 0x289   :  { %1265 = vsyncadd [#allocation3], 4294965248 }
 0x28a   :  { %1266 = dma.done.wait [#allocation5], 256  }
 0x28b   :  { %1267 = vsyncadd [#allocation5], 4294967040 }
 0x28c   :  { %938 = vsyncpa [#allocation3], 1 }
 0x28d   :  { %939 = vsyncpa [#allocation5], 1 }

</bundles_post_ra>
